<compile_context>
chip_gen: v7x
topology: tpu7x:2x2x1
jax: 0.10.0
libtpu: 0.0.40
codegen_flags: <defaults>
</compile_context>

<pallas_src>
import jax
import jax.numpy as jnp
from jax.experimental import pallas as pl
from jax.experimental.pallas import tpu as pltpu

HIDDEN = 768           # q-former hidden size (fixed by Linear(768, 1))
NUM_QUERY_TOKENS = 33  # 32 tokens remain after dropping token 0


def _vqa_head_kernel(x_ref, w_ref, b_ref, o_ref):
    """Fused token-drop + Linear(768->1) + mean over tokens.

    x_ref: (1, S, D) VMEM -- q-former last_hidden_state (token 0 still present)
    w_ref: (1, D)    VMEM -- Linear weight, PyTorch (out_features, in_features) layout
    b_ref: (1,)      SMEM -- Linear bias
    o_ref: (1, 1)    SMEM -- mean_{s>=1}( x[s] @ w.T + b )
    """
    x = x_ref[0].astype(jnp.float32)           # (S, D), in-register upcast
    w = w_ref[...].astype(jnp.float32)         # (1, D)
    s = x.shape[0]

    # mean(x[1:] @ w.T) + b
    #   == (1/(S-1)) * sum_d( (colsum_all - row0)[d] * w[d] ) + b
    colsum = jnp.sum(x, axis=0, keepdims=True) - x[0:1, :]   # (1, D), token 0 dropped
    total = jnp.sum(colsum * w)                              # VPU mul + XLU lane reduce
    o_ref[0, 0] = total * (1.0 / (s - 1)) + b_ref[0]


def vqa_head(last_hidden_state, weight, bias):
    """last_hidden_state: (1, S, D); weight: (1, D); bias: (1,) -> (1, 1) f32."""
    _, _, d = last_hidden_state.shape
    w = weight.reshape(1, d)                    # no-op for PyTorch (1, 768) layout
    b = bias.astype(jnp.float32).reshape(1)     # 4-byte scalar, SMEM-friendly

    return pl.pallas_call(
        _vqa_head_kernel,
        out_shape=jax.ShapeDtypeStruct((1, 1), jnp.float32),
        in_specs=[
            pl.BlockSpec(memory_space=pltpu.MemorySpace.VMEM),   # full hidden state
            pl.BlockSpec(memory_space=pltpu.MemorySpace.VMEM),   # weight row
            pl.BlockSpec(memory_space=pltpu.MemorySpace.SMEM),   # bias scalar
        ],
        out_specs=pl.BlockSpec(memory_space=pltpu.MemorySpace.SMEM),
    )(last_hidden_state, w, b)


if __name__ == "__main__":
    key = jax.random.PRNGKey(0)
    k_hidden, k_w, k_b = jax.random.split(key, 3)

    # Synthetic stand-in for blip_model(...)['qformer_outputs'].last_hidden_state
    last_hidden_state = jax.random.normal(
        k_hidden, (1, NUM_QUERY_TOKENS, HIDDEN), dtype=jnp.float32
    )

    # Deterministic Linear(768, 1) parameters (PyTorch weight layout (out, in)).
    weight = jax.random.normal(k_w, (1, HIDDEN), dtype=jnp.float32) * 0.02
    bias = jax.random.normal(k_b, (1,), dtype=jnp.float32) * 0.02

    out = vqa_head(last_hidden_state, weight, bias)
    out = jax.block_until_ready(out)

    # Reference check in plain JAX (same math as the PyTorch forward).
    x_ref = last_hidden_state[0, 1:, :]
    ref = jnp.mean(x_ref @ weight.T + bias, axis=0, keepdims=True)
    assert out.shape == (1, 1)
    assert jnp.allclose(out, ref, atol=1e-4, rtol=1e-4), (out, ref)

    print("KERNEL_OK")
</pallas_src>

<mosaic_0001>
module attributes {stable_mosaic.version = 11 : i64} {
  func.func @_vqa_head_kernel(%arg0: memref<1x33x768xf32, #tpu.memory_space<vmem>>, %arg1: memref<1x768xf32, #tpu.memory_space<vmem>>, %arg2: memref<1xf32, #tpu.memory_space<smem>>, %arg3: memref<1x1xf32, #tpu.memory_space<smem>>) attributes {dimension_semantics = [], scalar_prefetch = 0 : i64, scratch_operands = 0 : i64, tpu.core_type = #tpu.core_type<tc>} {
    %c0 = arith.constant 0 : index
    %c0_0 = arith.constant 0 : index
    %c0_1 = arith.constant 0 : index
    %0 = vector.load %arg0[%c0, %c0_0, %c0_1] : memref<1x33x768xf32, #tpu.memory_space<vmem>>, vector<1x33x768xf32>
    %1 = vector.shape_cast %0 : vector<1x33x768xf32> to vector<33x768xf32>
    %c0_2 = arith.constant 0 : index
    %c0_3 = arith.constant 0 : index
    %2 = vector.load %arg1[%c0_2, %c0_3] : memref<1x768xf32, #tpu.memory_space<vmem>>, vector<1x768xf32>
    %cst = arith.constant dense<0.000000e+00> : vector<768xf32>
    %3 = vector.multi_reduction <add>, %1, %cst [0] : vector<33x768xf32> to vector<768xf32>
    %4 = vector.shape_cast %3 : vector<768xf32> to vector<1x768xf32>
    %5 = vector.extract_strided_slice %1 {offsets = [0, 0], sizes = [1, 768], strides = [1, 1]} : vector<33x768xf32> to vector<1x768xf32>
    %6 = arith.subf %4, %5 : vector<1x768xf32>
    %7 = arith.mulf %6, %2 : vector<1x768xf32>
    %8 = vector.shape_cast %7 : vector<1x768xf32> to vector<1x1x768xf32>
    %cst_4 = arith.constant dense<0.000000e+00> : vector<1xf32>
    %9 = vector.multi_reduction <add>, %8, %cst_4 [1, 2] : vector<1x1x768xf32> to vector<1xf32>
    %10 = vector.shape_cast %9 : vector<1xf32> to vector<1x1x1xf32>
    %11 = vector.extract %10[0, 0, 0] : f32 from vector<1x1x1xf32>
    %cst_5 = arith.constant 3.125000e-02 : f32
    %12 = arith.mulf %11, %cst_5 : f32
    %c0_6 = arith.constant 0 : index
    %13 = memref.load %arg2[%c0_6] : memref<1xf32, #tpu.memory_space<smem>>
    %14 = arith.addf %12, %13 : f32
    %c0_7 = arith.constant 0 : index
    %c0_8 = arith.constant 0 : index
    %15 = memref.load %arg3[%c0_7, %c0_8] : memref<1x1xf32, #tpu.memory_space<smem>>
    memref.store %14, %arg3[%c0_7, %c0_8] : memref<1x1xf32, #tpu.memory_space<smem>>
    return
  }
}

</mosaic_0001>

<bundles_post_ra>
// kernel: tpu_custom_call.1
= control target key start
LH: loop header
LB: loop body
LE: loop exit
PB: predicated region body
PF: predicated region fallthrough
CT: control target
= control target key end

     0   :  { %v121_v15 = vlaneseq  ;;  %vm50_vm0 = vcmask 1040384   ;;  %s383_s0 = inlined_call_operand.vmem [shape: f32[1,33,768], index: 0, kind: input, shape index: {}]   ;;  %s384_s1 = inlined_call_operand.vmem [shape: f32[1,768], index: 1, kind: input, shape index: {}]   ;;  %s385_s2 = inlined_call_operand.<no memory space> [shape: f32[1], index: 2, kind: input, shape index: {}]   ;;  %s386_s3 = inlined_call_operand.hbm [shape: f32[1,1], index: 3, kind: output, shape index: {}]  }
   0x1   :  { %v234_v0 = vld [vmem:[%s383_s0] sm:$0xff]  ;;  %v239_v1 = vld [vmem:[%s383_s0 + $0x8] sm:$0xff]  ;;  %v244_v2 = vld [vmem:[%s383_s0 + $0x10] sm:$0xff] }
   0x2   :  { %v249_v3 = vld [vmem:[%s383_s0 + $0x18] sm:$0xff]  ;;  %v254_v4 = vld [vmem:[%s383_s0 + $0x20] sm:$0xff]  ;;  %v259_v5 = vld [vmem:[%s383_s0 + $0x28] sm:$0xff]  ;;  %v321_v40 = vshrl.u32 %v121_v15, 7 }
   0x3   :  { %v22_v6 = vld [vmem:[%s383_s0 + $0x30] sm:$0xff]  ;;  %v23_v7 = vld [vmem:[%s383_s0 + $0x38] sm:$0xff]  ;;  %v24_v8 = vld [vmem:[%s383_s0 + $0x40] sm:$0xff] }
   0x4   :  { %v25_v9 = vld [vmem:[%s383_s0 + $0x48] sm:$0xff]  ;;  %v26_v10 = vld [vmem:[%s383_s0 + $0x50] sm:$0xff]  ;;  %v27_v11 = vld [vmem:[%s383_s0 + $0x58] sm:$0xff]  ;;  %v47_v12 = vadd.f32 %v22_v6, %v234_v0  ;;  %v59_v13 = vadd.f32 %v23_v7, %v239_v1  ;;  %v70_v14 = vadd.f32 %v24_v8, %v244_v2 }
   0x5   :  { %v28_v16 = vld [vmem:[%s383_s0 + $0x60] sm:$0xff]  ;;  %v29_v17 = vld [vmem:[%s383_s0 + $0x68] sm:$0xff]  ;;  %v30_v18 = vld [vmem:[%s383_s0 + $0x70] sm:$0xff]  ;;  %v81_v19 = vadd.f32 %v25_v9, %v249_v3  ;;  %v92_v20 = vadd.f32 %v26_v10, %v254_v4  ;;  %v103_v21 = vadd.f32 %v27_v11, %v259_v5 }
   0x6   :  { %v31_v22 = vld [vmem:[%s383_s0 + $0x78] sm:$0xff]  ;;  %v32_v23 = vld [vmem:[%s383_s0 + $0x80] sm:$0xff]  ;;  %v33_v24 = vld [vmem:[%s383_s0 + $0x88] sm:$0xff]  ;;  %v48_v25 = vadd.f32 %v47_v12, %v28_v16  ;;  %v60_v26 = vadd.f32 %v59_v13, %v29_v17  ;;  %v71_v27 = vadd.f32 %v70_v14, %v30_v18 }
   0x7   :  { %v34_v28 = vld [vmem:[%s383_s0 + $0x90] sm:$0xff]  ;;  %v35_v29 = vld [vmem:[%s383_s0 + $0x98] sm:$0xff]  ;;  %v36_v30 = vld [vmem:[%s383_s0 + $0xa0] sm:$0xff]  ;;  %v82_v31 = vadd.f32 %v81_v19, %v31_v22  ;;  %v93_v32 = vadd.f32 %v92_v20, %v32_v23  ;;  %v104_v33 = vadd.f32 %v103_v21, %v33_v24 }
   0x8   :  { %v37_v34 = vld [vmem:[%s383_s0 + $0xa8] sm:$0xff]  ;;  %v38_v35 = vld [vmem:[%s383_s0 + $0xb0] sm:$0xff]  ;;  %v39_v36 = vld [vmem:[%s383_s0 + $0xb8] sm:$0xff]  ;;  %v49_v37 = vadd.f32 %v48_v25, %v34_v28  ;;  %v61_v38 = vadd.f32 %v60_v26, %v35_v29  ;;  %v72_v39 = vadd.f32 %v71_v27, %v36_v30 }
   0x9   :  { %v40_v41 = vld [vmem:[%s383_s0 + $0xc0] sm:$0x1]  ;;  %v41_v42 = vld [vmem:[%s383_s0 + $0xc8] sm:$0x1]  ;;  %v42_v43 = vld [vmem:[%s383_s0 + $0xd0] sm:$0x1]  ;;  %v83_v44 = vadd.f32 %v82_v31, %v37_v34  ;;  %v94_v48 = vadd.f32 %v93_v32, %v38_v35  ;;  %v105_v49 = vadd.f32 %v104_v33, %v39_v36 }
   0xa   :  { %v43_v45 = vld [vmem:[%s383_s0 + $0xd8] sm:$0x1]  ;;  %v44_v46 = vld [vmem:[%s383_s0 + $0xe0] sm:$0x1]  ;;  %v45_v47 = vld [vmem:[%s383_s0 + $0xe8] sm:$0x1] }
   0xb   :  { %v51_v50 = vsel %vm50_vm0, %v40_v41, 0.0  ;;  %v62_v51 = vsel %vm50_vm0, %v41_v42, 0.0  ;;  %v73_v52 = vsel %vm50_vm0, %v42_v43, 0.0  ;;  %v84_v53 = vsel %vm50_vm0, %v43_v45, 0.0 }
   0xc   :  { %v52_v54 = vadd.f32 %v51_v50, %v49_v37  ;;  %v63_v55 = vadd.f32 %v62_v51, %v61_v38  ;;  %v74_v56 = vadd.f32 %v73_v52, %v72_v39  ;;  %v85_v57 = vadd.f32 %v84_v53, %v83_v44 }
   0xd   :  { %9 = vsyncpa [#allocation4], 0  ;;  %v95_v58 = vsel %vm50_vm0, %v44_v46, 0.0  ;;  %v106_v59 = vsel %vm50_vm0, %v45_v47, 0.0  ;;  %v123_v8 = vsub.s32 0, %v321_v40  ;;  %v127_v9 = vsub.s32 1, %v321_v40 }
   0xe   :  { %v53_v60 = vrot.slane %v52_v54, 4  ;;  %v64_v61 = vrot.slane %v63_v55, 4  ;;  %v75_v62 = vrot.slane %v74_v56, 4  ;;  %v86_v63 = vrot.slane %v85_v57, 4  ;;  %v46_v10 = vld [vmem:[%s384_s1] sm:$0x3f] }
   0xf   :  { %v96_v6 = vadd.f32 %v95_v58, %v94_v48  ;;  %v107_v7 = vadd.f32 %v106_v59, %v105_v49  ;;  %v131_v17 = vsub.s32 2, %v321_v40  ;;  %v135_v18 = vsub.s32 3, %v321_v40  ;;  %s198_s25 = scalar_lea.hbm %s386_s3, 16 }
  0x10   :  { %v54_v11 = vadd.f32 %v53_v60, %v52_v54  ;;  %v65_v12 = vadd.f32 %v64_v61, %v63_v55  ;;  %v76_v13 = vadd.f32 %v75_v62, %v74_v56  ;;  %v87_v14 = vadd.f32 %v86_v63, %v85_v57  ;;  %p199_p0 = scmp.ne.s32.totalorder %s386_s3, %s198_s25  ;;  %p202_p1 = scmp.lt.u32.totalorder %s198_s25, %s386_s3 }
  0x11   :  { %v97_v15 = vrot.slane %v96_v6, 4  ;;  %v108_v16 = vrot.slane %v107_v7, 4  ;;  %v124_v25 = vrot.slane %v46_v10, %v123_v8  ;;  %v128_v26 = vrot.slane %v46_v10, %v127_v9 }
  0x12   :  { %v55_v19 = vrot.slane %v54_v11, 2  ;;  %v66_v20 = vrot.slane %v65_v12, 2  ;;  %v77_v21 = vrot.slane %v76_v13, 2  ;;  %v88_v22 = vrot.slane %v87_v14, 2  ;;  %p204_p2 = pnand %p202_p1, %p199_p0 }
  0x13   :  { %v98_v23 = vadd.f32 %v97_v15, %v96_v6  ;;  %v109_v24 = vadd.f32 %v108_v16, %v107_v7  ;;  %v132_v33 = vrot.slane %v46_v10, %v131_v17  ;;  %v136_v34 = vrot.slane %v46_v10, %v135_v18 }
  0x14   :  { %v56_v27 = vadd.f32 %v55_v19, %v54_v11  ;;  %v67_v28 = vadd.f32 %v66_v20, %v65_v12  ;;  %v78_v29 = vadd.f32 %v77_v21, %v76_v13  ;;  %v89_v30 = vadd.f32 %v88_v22, %v87_v14 }
  0x15   :  { %v99_v31 = vrot.slane %v98_v23, 2  ;;  %v110_v32 = vrot.slane %v109_v24, 2  ;;  %v139_v42 = vsub.s32 4, %v321_v40  ;;  %v143_v43 = vsub.s32 5, %v321_v40 }
  0x16   :  { %v57_v35 = vrot.slane %v56_v27, 1  ;;  %v68_v36 = vrot.slane %v67_v28, 1  ;;  %v79_v37 = vrot.slane %v78_v29, 1  ;;  %v90_v38 = vrot.slane %v89_v30, 1 }
  0x17   :  { %v100_v39 = vadd.f32 %v99_v31, %v98_v23  ;;  %v111_v41 = vadd.f32 %v110_v32, %v109_v24  ;;  %v140_v56 = vrot.slane %v46_v10, %v139_v42  ;;  %v144_v57 = vrot.slane %v46_v10, %v143_v43 }
  0x18   :  { %v58_v44 = vadd.f32 %v57_v35, %v56_v27  ;;  %v69_v45 = vadd.f32 %v68_v36, %v67_v28  ;;  %v80_v46 = vadd.f32 %v79_v37, %v78_v29  ;;  %v91_v47 = vadd.f32 %v90_v38, %v89_v30 }
  0x19   :  { %v101_v48 = vrot.slane %v100_v39, 1  ;;  %v112_v49 = vrot.slane %v111_v41, 1 }
  0x1a   :  { %v114_v50 = vsub.f32 %v58_v44, %v234_v0  ;;  %v115_v51 = vsub.f32 %v69_v45, %v239_v1  ;;  %v116_v52 = vsub.f32 %v80_v46, %v244_v2  ;;  %v117_v53 = vsub.f32 %v91_v47, %v249_v3 }
  0x1b   :  { %v102_v54 = vadd.f32 %v101_v48, %v100_v39  ;;  %v113_v55 = vadd.f32 %v112_v49, %v111_v41 }
  0x1c   :  { %v151_v58 = vmul.f32 %v124_v25, %v114_v50  ;;  %v152_v40 = vmul.f32 %v128_v26, %v115_v51  ;;  %v153_v59 = vmul.f32 %v132_v33, %v116_v52  ;;  %v154_v60 = vmul.f32 %v136_v34, %v117_v53 }
  0x1d   :  { %v118_v61 = vsub.f32 %v102_v54, %v254_v4  ;;  %v119_v62 = vsub.f32 %v113_v55, %v259_v5 }
  0x1e   :  { %v157_v0 = vsel %vm50_vm0, %v151_v58, 0.0  ;;  %v158_v1 = vsel %vm50_vm0, %v152_v40, 0.0  ;;  %v160_v2 = vsel %vm50_vm0, %v153_v59, 0.0  ;;  %v162_v7 = vsel %vm50_vm0, %v154_v60, 0.0 }
  0x1f   :  { %v155_v63 = vmul.f32 %v140_v56, %v118_v61  ;;  %v159_v3 = vadd.f32 %v158_v1, %v157_v0  ;;  %v156_v6 = vmul.f32 %v144_v57, %v119_v62 }
  0x21   :  { %v161_v8 = vadd.f32 %v160_v2, %v159_v3  ;;  %v164_v9 = vsel %vm50_vm0, %v155_v63, 0.0  ;;  %v166_v11 = vsel %vm50_vm0, %v156_v6, 0.0 }
  0x23   :  { %v163_v10 = vadd.f32 %v162_v7, %v161_v8 }
  0x25   :  { %v165_v4 = vadd.f32 %v164_v9, %v163_v10 }
  0x27   :  { %v167_v12 = vadd.f32 %v166_v11, %v165_v4 }
  0x29   :  { %168 = vadd.xlane.f32.xlu0 %v167_v12 }
  0xb6   :  { %v169_v5 = vpop.xlane.xlu0 %168 }
  0xb7   :  { %v170_v13 = vrot.slane %v169_v5, 4 }
  0xb9   :  { %v171_v14 = vadd.f32 %v170_v13, %v169_v5 }
  0xbb   :  { %v172_v15 = vrot.slane %v171_v14, 2 }
  0xbd   :  { %v173_v16 = vadd.f32 %v172_v15, %v171_v14 }
  0xbf   :  { %v174_v17 = vrot.slane %v173_v16, 1 }
  0xc1   :  { %v175_v18 = vadd.f32 %v174_v17, %v173_v16 }
  0xc3   :  { %195 = vpush %v175_v18 }
  0xf4   :  { %s196_s1 = spop %195 }
  0xf5   :  { %s177_s19 = smul.f32 0.03125, %s196_s1 }
  0xf7   :  { %s179_s22 = sadd.f32 %s177_s19, %s385_s2 }
  0xf9   :  { %181 = sst [smem:[#allocation3]] %s179_s22 }
  0xfa   :  { %207 = shalt.err (!%p204_p2)
}
  0xfb   :  { %s210_s30 = smov [#allocation3]  }
  0xfc   :  { %189 = dma.smem_to_hbm %s210_s30, 16, %s386_s3, [#allocation4]  }
  0xfd   :  { %208 = dma.done.wait [#allocation4], 16  }
  0xfe   :  { %209 = vsyncadd [#allocation4], 4294967280 }
  0xff   :  { %193 = sfence }
 0x100   :  { %194 = vsyncpa [#allocation4], 1 }

</bundles_post_ra>
